<compile_context>
chip_gen: v5e
topology: v5e:2x2
jax: 0.10.0
libtpu: 0.0.40
codegen_flags: <defaults>
</compile_context>

<pallas_src>
import jax
import jax.numpy as jnp
from jax.experimental import pallas as pl
from jax.experimental.pallas import tpu as pltpu


def _round_up(v, m):
    return ((v + m - 1) // m) * m


def lora_kernel(x_ref, wt_ref, bias_ref, at_ref, bt_ref, o_ref, acc_ref, xb_ref):
    j = pl.program_id(1)          # N tile index
    k = pl.program_id(2)          # K (reduction) tile index

    @pl.when(k == 0)
    def _():
        acc_ref[...] = jnp.zeros_like(acc_ref)

    @pl.when(jnp.logical_and(j == 0, k == 0))
    def _():
        xb_ref[...] = jnp.zeros_like(xb_ref)

    x = x_ref[...]                                            # [TM, TK]

    # Base path: accumulate x @ W^T over K on the MXU (f32 accumulation).
    acc_ref[...] += jnp.dot(x, wt_ref[...], preferred_element_type=jnp.float32)

    # LoRA down-projection x @ B^T: computed once per M tile (j == 0 only),
    # cached in a tiny (TM, r) scratch and reused for every N tile.
    @pl.when(j == 0)
    def _():
        xb_ref[...] += jnp.dot(x, bt_ref[...], preferred_element_type=jnp.float32)

    # Finalize at the last K step: LoRA up-projection + bias, single store.
    @pl.when(k == pl.num_programs(2) - 1)
    def _():
        lora = jnp.dot(xb_ref[...], at_ref[...], preferred_element_type=jnp.float32)
        o_ref[...] = (acc_ref[...] + lora + bias_ref[...]).astype(o_ref.dtype)


def lora_linear(x, W, bias, A, B, *, alpha=1.0):
    """LoRA-augmented linear layer.

    x: [..., in_features]; W: [out, in]; bias: [out]; A: [out, r]; B: [r, in].
    Returns: [..., out_features]
    """
    r = A.shape[1]
    scale = alpha / r

    orig_shape = x.shape
    K = orig_shape[-1]
    N = W.shape[0]
    x2d = x.reshape(-1, K)
    M = x2d.shape[0]

    # Tile sizes: lane-dense (>=128) output / contraction tiles, MXU-friendly.
    # Footprint at (256, 256, 512) f32 with double-buffering is ~3 MiB, safe on
    # v5e/v6e (128 MiB VMEM) and v7x (64 MiB).
    TM = min(256, _round_up(M, 8))
    TN = min(256, _round_up(N, 128))
    TK = min(512, _round_up(K, 128))
    Mp, Np, Kp = _round_up(M, TM), _round_up(N, TN), _round_up(K, TK)

    # One-time layout plumbing: pad + pre-transpose so the kernel never does .T,
    # and fold the LoRA scale into A (O(N*r) once instead of O(M*N) per call).
    xp = jnp.zeros((Mp, Kp), x.dtype).at[:M, :K].set(x2d)
    wt = jnp.zeros((Kp, Np), W.dtype).at[:K, :N].set(W.T)
    bt = jnp.zeros((Kp, r), B.dtype).at[:K, :].set(B.T)
    at = jnp.zeros((r, Np), A.dtype).at[:, :N].set(A.T * jnp.asarray(scale, A.dtype))
    bias2d = jnp.zeros((1, Np), bias.dtype).at[0, :N].set(bias)

    grid = (Mp // TM, Np // TN, Kp // TK)

    cost = pl.CostEstimate(
        flops=2 * M * N * K + 2 * M * K * r + 2 * M * r * N,
        transcendentals=0,
        bytes_accessed=(x2d.size + W.size + A.size + B.size + bias.size + M * N)
        * x.dtype.itemsize,
    )

    out_padded = pl.pallas_call(
        lora_kernel,
        out_shape=jax.ShapeDtypeStruct((Mp, Np), x.dtype),
        grid_spec=pltpu.PrefetchScalarGridSpec(
            num_scalar_prefetch=0,
            grid=grid,
            in_specs=[
                pl.BlockSpec((TM, TK), lambda i, j, k: (i, k)),   # x
                pl.BlockSpec((TK, TN), lambda i, j, k: (k, j)),   # W^T  [K, N]
                pl.BlockSpec((1, TN), lambda i, j, k: (0, j)),    # bias [1, N]
                pl.BlockSpec((r, TN), lambda i, j, k: (0, j)),    # (A*scale)^T
                pl.BlockSpec((TK, r), lambda i, j, k: (k, 0)),    # B^T  [K, r]
            ],
            out_specs=pl.BlockSpec((TM, TN), lambda i, j, k: (i, j)),
            scratch_shapes=[
                pltpu.VMEM((TM, TN), jnp.float32),   # base accumulator
                pltpu.VMEM((TM, r), jnp.float32),    # cached x @ B^T per M tile
            ],
        ),
        compiler_params=pltpu.CompilerParams(
            dimension_semantics=("parallel", "arbitrary", "arbitrary"),
        ),
        cost_estimate=cost,
    )(xp, wt, bias2d, at, bt)

    return out_padded[:M, :N].reshape(*orig_shape[:-1], N)


if __name__ == "__main__":
    # Small deterministic setup consistent with the module:
    #   original_layer = nn.Linear(in_features=32, out_features=32)
    #   r = 8, alpha = 1.0
    batch, seq, in_features, out_features, r, alpha = 2, 8, 32, 32, 8, 1.0

    key = jax.random.PRNGKey(0)
    kx, kw, kb, ka, kbm = jax.random.split(key, 5)

    x = jax.random.normal(kx, (batch, seq, in_features), dtype=jnp.float32)
    W = jax.random.normal(kw, (out_features, in_features), dtype=jnp.float32) * 0.1
    bias = jax.random.normal(kb, (out_features,), dtype=jnp.float32) * 0.1
    A = jax.random.normal(ka, (out_features, r), dtype=jnp.float32) * 0.01
    B = jax.random.normal(kbm, (r, in_features), dtype=jnp.float32) * 0.01

    out = lora_linear(x, W, bias, A, B, alpha=alpha)
    out = jax.block_until_ready(out)

    # Pure-JAX reference to validate semantics.
    scale = alpha / r
    ref = x @ W.T + bias + (x @ B.T @ A.T) * scale
    assert out.shape == (batch, seq, out_features)
    assert jnp.allclose(out, ref, atol=1e-5, rtol=1e-5), "mismatch vs reference"

    print("KERNEL_OK")
</pallas_src>

<mosaic_0001>
module attributes {stable_mosaic.version = 11 : i64} {
  func.func @lora_kernel(%arg0: i32, %arg1: i32, %arg2: i32, %arg3: memref<16x128xf32, #tpu.memory_space<vmem>>, %arg4: memref<128x128xf32, #tpu.memory_space<vmem>>, %arg5: memref<1x128xf32, #tpu.memory_space<vmem>>, %arg6: memref<8x128xf32, #tpu.memory_space<vmem>>, %arg7: memref<128x8xf32, #tpu.memory_space<vmem>>, %arg8: memref<16x128xf32, #tpu.memory_space<vmem>>, %arg9: memref<16x128xf32, #tpu.memory_space<vmem>>, %arg10: memref<16x8xf32, #tpu.memory_space<vmem>>) attributes {dimension_semantics = [#tpu.dimension_semantics<parallel>, #tpu.dimension_semantics<arbitrary>, #tpu.dimension_semantics<arbitrary>], iteration_bounds = array<i64: 1, 1, 1>, scalar_prefetch = 0 : i64, scratch_operands = 2 : i64, tpu.core_type = #tpu.core_type<tc>, window_params = [{transform_indices = @transform_0, window_bounds = array<i64: 16, 128>}, {transform_indices = @transform_1, window_bounds = array<i64: 128, 128>}, {transform_indices = @transform_2, window_bounds = array<i64: 1, 128>}, {transform_indices = @transform_3, window_bounds = array<i64: 8, 128>}, {transform_indices = @transform_4, window_bounds = array<i64: 128, 8>}, {transform_indices = @transform_5, window_bounds = array<i64: 16, 128>}]} {
    %c0_i32 = arith.constant 0 : i32
    %0 = arith.cmpi eq, %arg2, %c0_i32 : i32
    %1 = arith.extui %0 : i1 to i32
    %c0_i32_0 = arith.constant 0 : i32
    %2 = arith.cmpi ne, %1, %c0_i32_0 : i32
    scf.if %2 {
      %cst_15 = arith.constant 0.000000e+00 : f32
      %20 = vector.broadcast %cst_15 : f32 to vector<16x128xf32>
      %c0_16 = arith.constant 0 : index
      %c0_17 = arith.constant 0 : index
      %21 = vector.load %arg9[%c0_16, %c0_17] : memref<16x128xf32, #tpu.memory_space<vmem>>, vector<16x128xf32>
      tpu.vector_store %arg9[%c0_16, %c0_17], %20 {strides = array<i32>} : memref<16x128xf32, #tpu.memory_space<vmem>>, vector<16x128xf32>,
    } else {
    }
    %c0_i32_1 = arith.constant 0 : i32
    %3 = arith.cmpi eq, %arg1, %c0_i32_1 : i32
    %c0_i32_2 = arith.constant 0 : i32
    %4 = arith.cmpi eq, %arg2, %c0_i32_2 : i32
    %5 = arith.andi %3, %4 : i1
    %6 = arith.extui %5 : i1 to i32
    %c0_i32_3 = arith.constant 0 : i32
    %7 = arith.cmpi ne, %6, %c0_i32_3 : i32
    scf.if %7 {
      %cst_15 = arith.constant 0.000000e+00 : f32
      %20 = vector.broadcast %cst_15 : f32 to vector<16x8xf32>
      %c0_16 = arith.constant 0 : index
      %c0_17 = arith.constant 0 : index
      %21 = vector.load %arg10[%c0_16, %c0_17] : memref<16x8xf32, #tpu.memory_space<vmem>>, vector<16x8xf32>
      tpu.vector_store %arg10[%c0_16, %c0_17], %20 {strides = array<i32>} : memref<16x8xf32, #tpu.memory_space<vmem>>, vector<16x8xf32>,
    } else {
    }
    %c0 = arith.constant 0 : index
    %c0_4 = arith.constant 0 : index
    %8 = vector.load %arg3[%c0, %c0_4] : memref<16x128xf32, #tpu.memory_space<vmem>>, vector<16x128xf32>
    %c0_5 = arith.constant 0 : index
    %c0_6 = arith.constant 0 : index
    %9 = vector.load %arg9[%c0_5, %c0_6] : memref<16x128xf32, #tpu.memory_space<vmem>>, vector<16x128xf32>
    %c0_7 = arith.constant 0 : index
    %c0_8 = arith.constant 0 : index
    %10 = vector.load %arg4[%c0_7, %c0_8] : memref<128x128xf32, #tpu.memory_space<vmem>>, vector<128x128xf32>
    %cst = arith.constant dense<0.000000e+00> : vector<16x128xf32>
    %11 = tpu.matmul %8, %10, %cst {dimension_numbers = #tpu.dot_dimension_numbers<[1], [0], [0], [1], [0, 0, 1, 1], [], []>} : vector<16x128xf32>, vector<128x128xf32>, vector<16x128xf32> -> vector<16x128xf32>
    %12 = arith.addf %9, %11 : vector<16x128xf32>
    %c0_9 = arith.constant 0 : index
    %c0_10 = arith.constant 0 : index
    %13 = vector.load %arg9[%c0_9, %c0_10] : memref<16x128xf32, #tpu.memory_space<vmem>>, vector<16x128xf32>
    tpu.vector_store %arg9[%c0_9, %c0_10], %12 {strides = array<i32>} : memref<16x128xf32, #tpu.memory_space<vmem>>, vector<16x128xf32>,
    %c0_i32_11 = arith.constant 0 : i32
    %14 = arith.cmpi eq, %arg1, %c0_i32_11 : i32
    %15 = arith.extui %14 : i1 to i32
    %c0_i32_12 = arith.constant 0 : i32
    %16 = arith.cmpi ne, %15, %c0_i32_12 : i32
    scf.if %16 {
      %c0_15 = arith.constant 0 : index
      %c0_16 = arith.constant 0 : index
      %20 = vector.load %arg10[%c0_15, %c0_16] : memref<16x8xf32, #tpu.memory_space<vmem>>, vector<16x8xf32>
      %c0_17 = arith.constant 0 : index
      %c0_18 = arith.constant 0 : index
      %21 = vector.load %arg7[%c0_17, %c0_18] : memref<128x8xf32, #tpu.memory_space<vmem>>, vector<128x8xf32>
      %cst_19 = arith.constant dense<0.000000e+00> : vector<16x8xf32>
      %22 = tpu.matmul %8, %21, %cst_19 {dimension_numbers = #tpu.dot_dimension_numbers<[1], [0], [0], [1], [0, 0, 1, 1], [], []>} : vector<16x128xf32>, vector<128x8xf32>, vector<16x8xf32> -> vector<16x8xf32>
      %23 = arith.addf %20, %22 : vector<16x8xf32>
      %c0_20 = arith.constant 0 : index
      %c0_21 = arith.constant 0 : index
      %24 = vector.load %arg10[%c0_20, %c0_21] : memref<16x8xf32, #tpu.memory_space<vmem>>, vector<16x8xf32>
      tpu.vector_store %arg10[%c0_20, %c0_21], %23 {strides = array<i32>} : memref<16x8xf32, #tpu.memory_space<vmem>>, vector<16x8xf32>,
    } else {
    }
    %c0_i32_13 = arith.constant 0 : i32
    %17 = arith.cmpi eq, %arg2, %c0_i32_13 : i32
    %18 = arith.extui %17 : i1 to i32
    %c0_i32_14 = arith.constant 0 : i32
    %19 = arith.cmpi ne, %18, %c0_i32_14 : i32
    scf.if %19 {
      %c0_15 = arith.constant 0 : index
      %c0_16 = arith.constant 0 : index
      %20 = vector.load %arg10[%c0_15, %c0_16] : memref<16x8xf32, #tpu.memory_space<vmem>>, vector<16x8xf32>
      %c0_17 = arith.constant 0 : index
      %c0_18 = arith.constant 0 : index
      %21 = vector.load %arg6[%c0_17, %c0_18] : memref<8x128xf32, #tpu.memory_space<vmem>>, vector<8x128xf32>
      %cst_19 = arith.constant dense<0.000000e+00> : vector<16x128xf32>
      %22 = tpu.matmul %20, %21, %cst_19 {dimension_numbers = #tpu.dot_dimension_numbers<[1], [0], [0], [1], [0, 0, 1, 1], [], []>} : vector<16x8xf32>, vector<8x128xf32>, vector<16x128xf32> -> vector<16x128xf32>
      %c0_20 = arith.constant 0 : index
      %c0_21 = arith.constant 0 : index
      %23 = vector.load %arg9[%c0_20, %c0_21] : memref<16x128xf32, #tpu.memory_space<vmem>>, vector<16x128xf32>
      %24 = arith.addf %23, %22 : vector<16x128xf32>
      %c0_22 = arith.constant 0 : index
      %c0_23 = arith.constant 0 : index
      %25 = vector.load %arg5[%c0_22, %c0_23] : memref<1x128xf32, #tpu.memory_space<vmem>>, vector<1x128xf32>
      %26 = vector.broadcast %25 : vector<1x128xf32> to vector<16x128xf32>
      %27 = arith.addf %24, %26 : vector<16x128xf32>
      %c0_24 = arith.constant 0 : index
      %c0_25 = arith.constant 0 : index
      %28 = vector.load %arg8[%c0_24, %c0_25] : memref<16x128xf32, #tpu.memory_space<vmem>>, vector<16x128xf32>
      tpu.vector_store %arg8[%c0_24, %c0_25], %27 {strides = array<i32>} : memref<16x128xf32, #tpu.memory_space<vmem>>, vector<16x128xf32>,
    } else {
    }
    return
  }
  func.func @transform_0(%arg0: i32, %arg1: i32, %arg2: i32) -> (i32, i32) {
    %c0_i32 = arith.constant 0 : i32
    return %arg0, %arg2 : i32, i32
  }
  func.func @transform_1(%arg0: i32, %arg1: i32, %arg2: i32) -> (i32, i32) {
    %c0_i32 = arith.constant 0 : i32
    return %arg2, %arg1 : i32, i32
  }
  func.func @transform_2(%arg0: i32, %arg1: i32, %arg2: i32) -> (i32, i32) {
    %c0_i32 = arith.constant 0 : i32
    %c0_i32_0 = arith.constant 0 : i32
    return %c0_i32, %arg1 : i32, i32
  }
  func.func @transform_3(%arg0: i32, %arg1: i32, %arg2: i32) -> (i32, i32) {
    %c0_i32 = arith.constant 0 : i32
    %c0_i32_0 = arith.constant 0 : i32
    return %c0_i32, %arg1 : i32, i32
  }
  func.func @transform_4(%arg0: i32, %arg1: i32, %arg2: i32) -> (i32, i32) {
    %c0_i32 = arith.constant 0 : i32
    %c0_i32_0 = arith.constant 0 : i32
    return %arg2, %c0_i32 : i32, i32
  }
  func.func @transform_5(%arg0: i32, %arg1: i32, %arg2: i32) -> (i32, i32) {
    %c0_i32 = arith.constant 0 : i32
    return %arg0, %arg1 : i32, i32
  }
}

</mosaic_0001>

<bundles_post_ra>
// kernel: tpu_custom_call.1
= control target key start
LH: loop header
LB: loop body
LE: loop exit
PB: predicated region body
PF: predicated region fallthrough
CT: control target
= control target key end

     0   :  { %10 = vsyncpa [#allocation5], 0  ;;  %s445_s0 = inlined_call_operand.hbm [shape: f32[16,128], index: 0, kind: input, shape index: {}]   ;;  %s446_s1 = inlined_call_operand.vmem [shape: f32[128,128], index: 1, kind: input, shape index: {}]   ;;  %s447_s2 = inlined_call_operand.vmem [shape: f32[1,128], index: 2, kind: input, shape index: {}]   ;;  %s448_s3 = inlined_call_operand.vmem [shape: f32[8,128], index: 3, kind: input, shape index: {}]   ;;  %s449_s4 = inlined_call_operand.vmem [shape: f32[128,8], index: 4, kind: input, shape index: {}]   ;;  %s450_s5 = inlined_call_operand.hbm [shape: f32[16,128], index: 5, kind: output, shape index: {}]  }
   0x1   :  { %11 = vsyncpa [#allocation6], 0  ;;  %s16_s20 = sshll.u32 %s445_s0, 4  ;;  %s290_s21 = smov [#allocation4]   ;;  %s17_s20 = int_to_ptr.hbm [resolvable:$true] %s16_s20 }
   0x2   :  { %s18_s22 = sshll.u32 %s290_s21, 4  ;;  %s291_s23 = smov 128   ;;  %s19_s22 = int_to_ptr.vmem [resolvable:$true] %s18_s22 }
   0x3   :  { %s292_s24 = smov 8  }
   0x4   :  { %24 = dma.hbm_to_vmem [thread:$0]  %s17_s20, 256, %s19_s22, [#allocation5], %s291_s23, %s291_s23, %s292_s24  }
   0x5   :  { %286 = dma.done.wait [#allocation5], 256  }
   0x6   :  { %287 = vsyncadd [#allocation5], 4294967040  ;;  %v118_v0 = vld [vmem:[%s449_s4 + $0x78] sm:$0xff]  ;;  %v117_v1 = vld [vmem:[%s449_s4 + $0x70] sm:$0xff]  ;;  %vm48_vm0 = vcmask 64512   ;;  %v293_v8 = vmov 0.0  }
   0x7   :  { %119 = vmatpush.msra.mxu1 %v118_v0  ;;  %v116_v2 = vld [vmem:[%s449_s4 + $0x68] sm:$0xff]  ;;  %v115_v3 = vld [vmem:[%s449_s4 + $0x60] sm:$0xff]  ;;  %v114_v4 = vld [vmem:[%s449_s4 + $0x58] sm:$0xff]  ;;  %49 = vst.msk [vmem:[#allocation3] sm:$0xff] %vm48_vm0, %v293_v8  ;;  %s294_s16 = smov [#allocation7]   ;;  %s201_s20 = sshll.u32 %s450_s5, 4  ;;  %s202_s20 = int_to_ptr.hbm [resolvable:$true] %s201_s20 }
   0x8   :  { %v113_v5 = vld [vmem:[%s449_s4 + $0x50] sm:$0xff]  ;;  %v70_v6 = vld [vmem:[%s446_s1 + $0x78] sm:$0xff]  ;;  %v112_v9 = vld [vmem:[%s449_s4 + $0x48] sm:$0xff]  ;;  %50 = vst.msk [vmem:[#allocation3 + $0x8] sm:$0xff] %vm48_vm0, %v293_v8  ;;  %s199_s17 = sshll.u32 %s294_s16, 4  ;;  %s200_s17 = int_to_ptr.vmem [resolvable:$true] %s199_s17 }
   0x9   :  { %120 = vmatpush.msra.mxu1 %v117_v1  ;;  %v69_v7 = vld [vmem:[%s446_s1 + $0x70] sm:$0xff]  ;;  %71 = vmatpush.msra.mxu0 %v70_v6  ;;  %v68_v10 = vld [vmem:[%s446_s1 + $0x68] sm:$0xff]  ;;  %v111_v11 = vld [vmem:[%s449_s4 + $0x40] sm:$0xff] }
   0xa   :  { %216 = vmatpush.msra.mxu3 %v70_v6  ;;  %v67_v12 = vld [vmem:[%s446_s1 + $0x60] sm:$0xff]  ;;  %v110_v13 = vld [vmem:[%s449_s4 + $0x38] sm:$0xff]  ;;  %v109_v15 = vld [vmem:[%s449_s4 + $0x30] sm:$0xff] }
   0xb   :  { %121 = vmatpush.msra.mxu1 %v116_v2  ;;  %72 = vmatpush.msra.mxu0 %v69_v7  ;;  %v66_v14 = vld [vmem:[%s446_s1 + $0x58] sm:$0xff]  ;;  %v65_v16 = vld [vmem:[%s446_s1 + $0x50] sm:$0xff]  ;;  %v108_v17 = vld [vmem:[%s449_s4 + $0x28] sm:$0xff] }
   0xc   :  { %217 = vmatpush.msra.mxu3 %v69_v7  ;;  %v64_v18 = vld [vmem:[%s446_s1 + $0x48] sm:$0xff]  ;;  %v107_v19 = vld [vmem:[%s449_s4 + $0x20] sm:$0xff]  ;;  %v106_v21 = vld [vmem:[%s449_s4 + $0x18] sm:$0xff] }
   0xd   :  { %122 = vmatpush.msra.mxu1 %v115_v3  ;;  %73 = vmatpush.msra.mxu0 %v68_v10  ;;  %v63_v20 = vld [vmem:[%s446_s1 + $0x40] sm:$0xff]  ;;  %v105_v22 = vld [vmem:[%s449_s4 + $0x10] sm:$0xff]  ;;  %v104_v23 = vld [vmem:[%s449_s4 + $0x8] sm:$0xff] }
   0xe   :  { %218 = vmatpush.msra.mxu3 %v68_v10  ;;  %v103_v24 = vld [vmem:[%s449_s4] sm:$0xff]  ;;  %v51_v25 = vld [vmem:[#allocation4] sm:$0xff]  ;;  %v52_v26 = vld [vmem:[#allocation4 + $0x8] sm:$0xff] }
   0xf   :  { %123 = vmatpush.msra.mxu1 %v114_v4  ;;  %74 = vmatpush.msra.mxu0 %v67_v12  ;;  %v62_v27 = vld [vmem:[%s446_s1 + $0x38] sm:$0xff]  ;;  %v61_v28 = vld [vmem:[%s446_s1 + $0x30] sm:$0xff]  ;;  %v60_v29 = vld [vmem:[%s446_s1 + $0x28] sm:$0xff] }
  0x10   :  { %219 = vmatpush.msra.mxu3 %v67_v12  ;;  %v59_v30 = vld [vmem:[%s446_s1 + $0x20] sm:$0xff]  ;;  %v58_v31 = vld [vmem:[%s446_s1 + $0x18] sm:$0xff]  ;;  %v57_v33 = vld [vmem:[%s446_s1 + $0x10] sm:$0xff] }
  0x11   :  { %124 = vmatpush.msra.mxu1 %v113_v5  ;;  %75 = vmatpush.msra.mxu0 %v66_v14  ;;  %v152_v32 = vld [vmem:[%s448_s3] sm:$0xff]  ;;  %v56_v34 = vld [vmem:[%s446_s1 + $0x8] sm:$0xff] }
  0x12   :  { %220 = vmatpush.msra.mxu3 %v66_v14  ;;  %175 = vmatpush.msra.mxu2 %v152_v32  ;;  %v55_v35 = vld [vmem:[%s446_s1] sm:$0xff]  ;;  %v102_v39 = vld [vmem:[#allocation3 + $0x8] sm:$0xff] }
  0x13   :  { %125 = vmatpush.msra.mxu1 %v112_v9  ;;  %76 = vmatpush.msra.mxu0 %v65_v16  ;;  %v101_v36 = vld [vmem:[#allocation3] sm:$0xff] }
  0x14   :  { %221 = vmatpush.msra.mxu3 %v65_v16  ;;  %v237_v45 = vld [vmem:[%s447_s2] ss:$0 sm:$0xff] }
  0x15   :  { %126 = vmatpush.msra.mxu1 %v111_v11  ;;  %77 = vmatpush.msra.mxu0 %v64_v18 }
  0x16   :  { %222 = vmatpush.msra.mxu3 %v64_v18 }
  0x17   :  { %127 = vmatpush.msra.mxu1 %v110_v13  ;;  %78 = vmatpush.msra.mxu0 %v63_v20 }
  0x18   :  { %223 = vmatpush.msra.mxu3 %v63_v20 }
  0x19   :  { %128 = vmatpush.msra.mxu1 %v109_v15  ;;  %79 = vmatpush.msra.mxu0 %v62_v27 }
  0x1a   :  { %224 = vmatpush.msra.mxu3 %v62_v27 }
  0x1b   :  { %129 = vmatpush.msra.mxu1 %v108_v17  ;;  %80 = vmatpush.msra.mxu0 %v61_v28 }
  0x1c   :  { %225 = vmatpush.msra.mxu3 %v61_v28 }
  0x1d   :  { %130 = vmatpush.msra.mxu1 %v107_v19  ;;  %81 = vmatpush.msra.mxu0 %v60_v29 }
  0x1e   :  { %226 = vmatpush.msra.mxu3 %v60_v29 }
  0x1f   :  { %131 = vmatpush.msra.mxu1 %v106_v21  ;;  %82 = vmatpush.msra.mxu0 %v59_v30 }
  0x20   :  { %227 = vmatpush.msra.mxu3 %v59_v30 }
  0x21   :  { %132 = vmatpush.msra.mxu1 %v105_v22  ;;  %83 = vmatpush.msra.mxu0 %v58_v31 }
  0x22   :  { %228 = vmatpush.msra.mxu3 %v58_v31 }
  0x23   :  { %133 = vmatpush.msra.mxu1 %v104_v23  ;;  %84 = vmatpush.msra.mxu0 %v57_v33 }
  0x24   :  { %229 = vmatpush.msra.mxu3 %v57_v33 }
  0x25   :  { %134 = vmatpush.msra.mxu1 %v103_v24  ;;  %85 = vmatpush.msra.mxu0 %v56_v34 }
  0x26   :  { %135 = vmatmul.f32.vlgmr.msra.gmra.mxu1 %v51_v25  ;;  %230 = vmatpush.msra.mxu3 %v56_v34 }
  0x27   :  { %86 = vmatpush.msra.mxu0 %v55_v35 }
  0x28   :  { %87 = vmatmul.f32.vlgmr.msra.gmra.mxu0 %v51_v25  ;;  %231 = vmatpush.msra.mxu3 %v55_v35 }
  0x29   :  { %90 = vmatmul.f32.vlgmr.msra.gmra.mxu3 %v52_v26 }
  0x2e   :  { %138 = vmatmul.f32.gmra.mxu1 %v52_v26 }
  0xa3   :  { %v136_v37 = vpop.f32.mrf.mxu1 }
  0xa4   :  { %v142_v38 = vadd.f32 %v136_v37, %v101_v36 }
  0xa5   :  { %v88_v44 = vpop.f32.mrf.mxu0 }
  0xa6   :  { %145 = vst.msk [vmem:[#allocation3] sm:$0xff] %vm48_vm0, %v142_v38 }
  0xab   :  { %v139_v40 = vpop.f32.mrf.mxu1 }
  0xac   :  { %v143_v41 = vadd.f32 %v139_v40, %v102_v39  ;;  %v91_v49 = vpop.f32.mrf.mxu3 }
  0xad   :  { %v150_v42 = vld [vmem:[#allocation3] sm:$0xff] }
  0xae   :  { %146 = vst.msk [vmem:[#allocation3 + $0x8] sm:$0xff] %vm48_vm0, %v143_v41  ;;  %214 = vmatmul.msk.f32.vlgmr.msra.gmra.mxu2 %vm48_vm0, %v150_v42 }
  0xb5   :  { %v151_v43 = vld [vmem:[#allocation3 + $0x8] sm:$0xff] }
  0xb6   :  { %215 = vmatmul.msk.f32.gmra.mxu2 %vm48_vm0, %v151_v43 }
 0x131   :  { %v177_v46 = vpop.f32.mrf.mxu2 }
 0x132   :  { %v185_v47 = vadd.f32 %v177_v46, %v88_v44 }
 0x134   :  { %v191_v48 = vadd.f32 %v237_v45, %v185_v47 }
 0x136   :  { %193 = vst [vmem:[#allocation7] sm:$0xff] %v191_v48 }
 0x139   :  { %v180_v50 = vpop.f32.mrf.mxu2 }
 0x13a   :  { %v186_v51 = vadd.f32 %v180_v50, %v91_v49 }
 0x13c   :  { %v192_v52 = vadd.f32 %v237_v45, %v186_v51 }
 0x13e   :  { %194 = vst [vmem:[#allocation7 + $0x8] sm:$0xff] %v192_v52 }
 0x13f   :  { %207 = dma.vmem_to_hbm [thread:$0]  %s200_s17, 256, %s202_s20, [#allocation6], %s291_s23, %s291_s23, %s292_s24  }
 0x140   :  { %288 = dma.done.wait [#allocation6], 256  }
 0x141   :  { %289 = vsyncadd [#allocation6], 4294967040 }
 0x142   :  { %212 = vsyncpa [#allocation5], 1 }
 0x143   :  { %213 = vsyncpa [#allocation6], 1 }

</bundles_post_ra>
